<compile_context>
chip_gen: v6e
topology: v6e:2x2x1
jax: 0.10.0
libtpu: 0.0.40
codegen_flags: <defaults>
</compile_context>

<pallas_src>
import functools
import math

import jax
import jax.numpy as jnp
from jax.experimental import pallas as pl
from jax.experimental.pallas import tpu as pltpu


_LANE = 128        # last block dim quantum (lane width)
_SUBLANE = 8       # second-to-last block dim quantum (sublane width)
_MAX_TB = 512      # batch-tile cap
_MAX_TILE = 512    # per-axis tile cap on the per-layer fallback path
_MIB = 1024 * 1024
_FUSED_VMEM_BUDGET = 40 * _MIB   # conservative: fits inside v7x's 64 MiB VMEM


def _round_up(x, m):
    return (x + m - 1) // m * m


def _pick_tile(total, cap, quantum):
    """Largest multiple of `quantum` <= cap that divides `total` (total % quantum == 0)."""
    t = max(quantum, (min(total, cap) // quantum) * quantum)
    while total % t:
        t -= quantum
    return t


def _vmem_limit(need_bytes):
    """Scoped-VMEM request: measured need + headroom, clamped to [32 MiB, 64 MiB]."""
    return int(min(max(need_bytes * 1.25, 32 * _MIB), 64 * _MIB))


# ----------------------------------------------------------------------------
# Path A: whole MLP fused into a single kernel (weights resident in VMEM).
# ----------------------------------------------------------------------------
def _fused_mlp_kernel(x_ref, *refs, n_layers, scale):
    """All layers for one (tb, Kp0) activation tile.

    refs = (w0, b0, w1, b1, ..., o_ref); w_k: (Kp_k, Np_k) = W_k.T (padded),
    b_k: (1, Np_k).  Accumulation in f32; ReLU after every Linear; Scale last.
    """
    o_ref = refs[-1]
    z = x_ref[...]
    acc = None
    for k in range(n_layers):
        w = refs[2 * k][...]
        b = refs[2 * k + 1][...]
        acc = jnp.dot(z, w, preferred_element_type=jnp.float32)
        acc = jnp.maximum(acc + b.astype(jnp.float32), 0.0)   # Linear + ReLU
        if k + 1 < n_layers:
            z = acc.astype(w.dtype)
    o_ref[...] = (acc * jnp.float32(scale)).astype(o_ref.dtype)


def _fused_mlp_call(x_p, wts_p, bs_p, *, scale, tb):
    Bp, Kp0 = x_p.shape
    NpL = wts_p[-1].shape[1]
    n_layers = len(wts_p)
    itemsize = jnp.dtype(x_p.dtype).itemsize

    # Activations tiled over batch; every weight/bias uses a constant block index
    # -> fetched once, resident across all batch tiles.
    in_specs = [pl.BlockSpec((tb, Kp0), lambda i: (i, 0))]
    for w, b in zip(wts_p, bs_p):
        kp, np_ = w.shape
        in_specs.append(pl.BlockSpec((kp, np_), lambda i: (0, 0)))
        in_specs.append(pl.BlockSpec((1, np_), lambda i: (0, 0)))
    out_specs = pl.BlockSpec((tb, NpL), lambda i: (i, 0))

    flops = 2 * Bp * sum(w.shape[0] * w.shape[1] for w in wts_p)
    param_bytes = sum(w.size + b.size for w, b in zip(wts_p, bs_p)) * itemsize
    bytes_accessed = itemsize * (Bp * Kp0 + Bp * NpL) + param_bytes

    need = (2 * tb * (Kp0 + NpL) * itemsize           # in/out tiles (double-buffered)
            + 2 * param_bytes                          # resident weights/biases
            + 4 * sum(tb * w.shape[1] for w in wts_p)) # f32 intermediates (upper bound)

    kernel = functools.partial(_fused_mlp_kernel, n_layers=n_layers,
                               scale=float(scale))
    # NOTE: grid may be (1,) for tiny batches; on v7x that leaves one TensorCore
    # idle, but for such sizes the kernel is launch-overhead-bound anyway.
    return pl.pallas_call(
        kernel,
        out_shape=jax.ShapeDtypeStruct((Bp, NpL), x_p.dtype),
        grid_spec=pltpu.PrefetchScalarGridSpec(
            num_scalar_prefetch=0,
            grid=(Bp // tb,),
            in_specs=in_specs,
            out_specs=out_specs,
        ),
        compiler_params=pltpu.CompilerParams(
            dimension_semantics=("parallel",),
            vmem_limit_bytes=_vmem_limit(need)),
        cost_estimate=pl.CostEstimate(
            flops=int(flops), transcendentals=0,
            bytes_accessed=int(bytes_accessed)),
    )(x_p, *[a for pair in zip(wts_p, bs_p) for a in pair])


# ----------------------------------------------------------------------------
# Path B (fallback for very large layers): per-layer kernel with K-split grid
# axis + f32 VMEM accumulator.
# ----------------------------------------------------------------------------
def _linear_act_kernel(z_ref, wt_ref, b_ref, o_ref, acc_ref, *, apply_relu, scale):
    @pl.when(pl.program_id(2) == 0)
    def _():
        acc_ref[...] = jnp.zeros_like(acc_ref)

    acc_ref[...] += jnp.dot(z_ref[...], wt_ref[...],
                            preferred_element_type=jnp.float32)

    @pl.when(pl.program_id(2) == pl.num_programs(2) - 1)
    def _():
        acc = acc_ref[...] + b_ref[...].astype(jnp.float32)
        if apply_relu:
            acc = jnp.maximum(acc, 0.0)
        if scale != 1.0:
            acc = acc * jnp.float32(scale)
        o_ref[...] = acc.astype(o_ref.dtype)


def _linear_act_call(x_p, wt_p, b_p, *, apply_relu, scale, tb):
    Bp, Kp = x_p.shape
    Kp2, Np = wt_p.shape
    assert Kp == Kp2 and b_p.shape == (1, Np) and Bp % tb == 0
    itemsize = jnp.dtype(x_p.dtype).itemsize
    tn = _pick_tile(Np, _MAX_TILE, _LANE)
    tk = _pick_tile(Kp, _MAX_TILE, _LANE)
    grid = (Bp // tb, Np // tn, Kp // tk)

    flops = 2 * Bp * Kp * Np
    bytes_accessed = itemsize * (Bp * Kp * (Np // tn)     # activation re-reads
                                 + Kp * Np * (Bp // tb)   # weight re-reads
                                 + Np + Bp * Np)
    need = 2 * (tb * tk + tk * tn + tb * tn) * itemsize + 4 * tb * tn

    kernel = functools.partial(_linear_act_kernel,
                               apply_relu=apply_relu, scale=float(scale))
    return pl.pallas_call(
        kernel,
        out_shape=jax.ShapeDtypeStruct((Bp, Np), x_p.dtype),
        grid_spec=pltpu.PrefetchScalarGridSpec(
            num_scalar_prefetch=0,
            grid=grid,
            in_specs=[
                pl.BlockSpec((tb, tk), lambda i, j, k: (i, k)),   # activations
                pl.BlockSpec((tk, tn), lambda i, j, k: (k, j)),   # W.T tile
                pl.BlockSpec((1, tn), lambda i, j, k: (0, j)),    # bias
            ],
            out_specs=pl.BlockSpec((tb, tn), lambda i, j, k: (i, j)),
            scratch_shapes=[pltpu.VMEM((tb, tn), jnp.float32)],
        ),
        compiler_params=pltpu.CompilerParams(
            dimension_semantics=("parallel", "parallel", "arbitrary"),
            vmem_limit_bytes=_vmem_limit(need)),
        cost_estimate=pl.CostEstimate(
            flops=int(flops), transcendentals=0,
            bytes_accessed=int(bytes_accessed)),
    )(x_p, wt_p, b_p)


# ----------------------------------------------------------------------------
# Forward (jit'd end to end): pad once -> fused or per-layer kernels -> slice.
# ----------------------------------------------------------------------------
def _mlp_forward(z, wts_p, bs_p, *, in_dim, out_dim, scale, dtype):
    B, D = z.shape
    assert D == in_dim
    tb = min(_round_up(B, _SUBLANE), _MAX_TB)
    Bp = _round_up(B, tb)
    Kp0 = wts_p[0].shape[0]
    NpL = wts_p[-1].shape[1]
    itemsize = jnp.dtype(dtype).itemsize

    # Pad activations once; zero columns stay zero through every layer.
    x = jnp.zeros((Bp, Kp0), dtype).at[:B, :D].set(z.astype(dtype))

    param_bytes = sum(w.size + b.size for w, b in zip(wts_p, bs_p)) * itemsize
    fused_need = (2 * tb * (Kp0 + NpL) * itemsize + 2 * param_bytes
                  + 4 * sum(tb * w.shape[1] for w in wts_p))

    if fused_need <= _FUSED_VMEM_BUDGET:
        x = _fused_mlp_call(x, wts_p, bs_p, scale=scale, tb=tb)
    else:
        n = len(wts_p)
        for k in range(n):
            last = k == n - 1
            x = _linear_act_call(x, wts_p[k], bs_p[k], apply_relu=True,
                                 scale=scale if last else 1.0, tb=tb)
    return x[:B, :out_dim]


class MLP:
    """JAX/Pallas port of the PyTorch MLP: (Linear -> ReLU) per layer + final Scale."""

    def __init__(self, features_dim_list, scaling_factor=1.0, key=None,
                 dtype=jnp.float32):
        # TODO(synk): only the default ReLU activation is implemented; an arbitrary
        # `activation_layer` nn.Module has no generic Pallas equivalent here.
        self.dims = list(features_dim_list)
        self.scaling_factor = float(scaling_factor)
        self.dtype = dtype
        self.weights = []   # unpadded (out, in) — PyTorch layout, kept for reference
        self.biases = []    # unpadded (out,)
        self.wts_p = []     # pre-transposed + zero-padded: (Kp, Np)
        self.bs_p = []      # zero-padded: (1, Np)
        if key is None:
            key = jax.random.PRNGKey(0)
        for k in range(len(self.dims) - 1):
            fan_in, fan_out = self.dims[k], self.dims[k + 1]
            key, kw, kb = jax.random.split(key, 3)
            bound = 1.0 / math.sqrt(fan_in)
            W = jax.random.uniform(kw, (fan_out, fan_in), jnp.float32,
                                   minval=-bound, maxval=bound)
            b = jax.random.uniform(kb, (fan_out,), jnp.float32,
                                   minval=-bound, maxval=bound)
            Kp = _round_up(fan_in, _LANE)
            Np = _round_up(fan_out, _LANE)
            # Transpose + pad ONCE (not per forward call); zero padding keeps the
            # extra lanes inert so padded activations chain layer to layer.
            wt_p = jnp.zeros((Kp, Np), dtype).at[:fan_in, :fan_out].set(
                W.T.astype(dtype))
            b_p = jnp.zeros((1, Np), dtype).at[0, :fan_out].set(b.astype(dtype))
            self.weights.append(W)
            self.biases.append(b)
            self.wts_p.append(wt_p)
            self.bs_p.append(b_p)

        self._forward_jit = jax.jit(functools.partial(
            _mlp_forward, in_dim=self.dims[0], out_dim=self.dims[-1],
            scale=self.scaling_factor, dtype=self.dtype))

    def forward(self, z):
        return self._forward_jit(z, tuple(self.wts_p), tuple(self.bs_p))

    __call__ = forward


if __name__ == "__main__":
    key = jax.random.PRNGKey(0)
    k_params, k_z = jax.random.split(key)

    features = [32, 64, 16]   # input dim 32, hidden 64, output 16
    batch = 16
    scaling = 0.5

    mlp = MLP(features, scaling_factor=scaling, key=k_params, dtype=jnp.float32)
    z = jax.random.normal(k_z, (batch, features[0]), dtype=jnp.float32)

    x = jax.block_until_ready(mlp.forward(z))
    assert x.shape == (batch, features[-1])

    # Pure-JAX reference mirroring the PyTorch Sequential exactly:
    # (Linear -> ReLU) for every layer, then Scale.
    ref = z
    for W, b in zip(mlp.weights, mlp.biases):
        ref = jnp.maximum(ref @ W.T + b, 0.0)
    ref = scaling * ref

    err = float(jnp.max(jnp.abs(x - ref)))
    assert jnp.allclose(x, ref, atol=1e-5, rtol=1e-5), f"max err {err}"
    print("KERNEL_OK")
</pallas_src>

<mosaic_0001>
module attributes {stable_mosaic.version = 11 : i64} {
  func.func @_fused_mlp_kernel(%arg0: i32, %arg1: memref<16x128xf32, #tpu.memory_space<vmem>>, %arg2: memref<128x128xf32, #tpu.memory_space<vmem>>, %arg3: memref<1x128xf32, #tpu.memory_space<vmem>>, %arg4: memref<128x128xf32, #tpu.memory_space<vmem>>, %arg5: memref<1x128xf32, #tpu.memory_space<vmem>>, %arg6: memref<16x128xf32, #tpu.memory_space<vmem>>) attributes {dimension_semantics = [#tpu.dimension_semantics<parallel>], iteration_bounds = array<i64: 1>, scalar_prefetch = 0 : i64, scratch_operands = 0 : i64, tpu.core_type = #tpu.core_type<tc>, window_params = [{transform_indices = @transform_0, window_bounds = array<i64: 16, 128>}, {pipeline_mode = #tpu.pipeline_mode<synchronous>, transform_indices = @transform_1, window_bounds = array<i64: 128, 128>}, {pipeline_mode = #tpu.pipeline_mode<synchronous>, transform_indices = @transform_2, window_bounds = array<i64: 1, 128>}, {pipeline_mode = #tpu.pipeline_mode<synchronous>, transform_indices = @transform_3, window_bounds = array<i64: 128, 128>}, {pipeline_mode = #tpu.pipeline_mode<synchronous>, transform_indices = @transform_4, window_bounds = array<i64: 1, 128>}, {transform_indices = @transform_5, window_bounds = array<i64: 16, 128>}]} {
    %c0 = arith.constant 0 : index
    %c0_0 = arith.constant 0 : index
    %0 = vector.load %arg1[%c0, %c0_0] : memref<16x128xf32, #tpu.memory_space<vmem>>, vector<16x128xf32>
    %c0_1 = arith.constant 0 : index
    %c0_2 = arith.constant 0 : index
    %1 = vector.load %arg2[%c0_1, %c0_2] : memref<128x128xf32, #tpu.memory_space<vmem>>, vector<128x128xf32>
    %c0_3 = arith.constant 0 : index
    %c0_4 = arith.constant 0 : index
    %2 = vector.load %arg3[%c0_3, %c0_4] : memref<1x128xf32, #tpu.memory_space<vmem>>, vector<1x128xf32>
    %cst = arith.constant dense<0.000000e+00> : vector<16x128xf32>
    %3 = tpu.matmul %0, %1, %cst {dimension_numbers = #tpu.dot_dimension_numbers<[1], [0], [0], [1], [0, 0, 1, 1], [], []>} : vector<16x128xf32>, vector<128x128xf32>, vector<16x128xf32> -> vector<16x128xf32>
    %4 = vector.broadcast %2 : vector<1x128xf32> to vector<16x128xf32>
    %5 = arith.addf %3, %4 : vector<16x128xf32>
    %cst_5 = arith.constant 0.000000e+00 : f32
    %6 = vector.broadcast %cst_5 : f32 to vector<16x128xf32>
    %7 = arith.maximumf %5, %6 : vector<16x128xf32>
    %c0_6 = arith.constant 0 : index
    %c0_7 = arith.constant 0 : index
    %8 = vector.load %arg4[%c0_6, %c0_7] : memref<128x128xf32, #tpu.memory_space<vmem>>, vector<128x128xf32>
    %c0_8 = arith.constant 0 : index
    %c0_9 = arith.constant 0 : index
    %9 = vector.load %arg5[%c0_8, %c0_9] : memref<1x128xf32, #tpu.memory_space<vmem>>, vector<1x128xf32>
    %cst_10 = arith.constant dense<0.000000e+00> : vector<16x128xf32>
    %10 = tpu.matmul %7, %8, %cst_10 {dimension_numbers = #tpu.dot_dimension_numbers<[1], [0], [0], [1], [0, 0, 1, 1], [], []>} : vector<16x128xf32>, vector<128x128xf32>, vector<16x128xf32> -> vector<16x128xf32>
    %11 = vector.broadcast %9 : vector<1x128xf32> to vector<16x128xf32>
    %12 = arith.addf %10, %11 : vector<16x128xf32>
    %cst_11 = arith.constant 0.000000e+00 : f32
    %13 = vector.broadcast %cst_11 : f32 to vector<16x128xf32>
    %14 = arith.maximumf %12, %13 : vector<16x128xf32>
    %cst_12 = arith.constant 5.000000e-01 : f32
    %15 = vector.broadcast %cst_12 : f32 to vector<16x128xf32>
    %16 = arith.mulf %14, %15 : vector<16x128xf32>
    %c0_13 = arith.constant 0 : index
    %c0_14 = arith.constant 0 : index
    %17 = vector.load %arg6[%c0_13, %c0_14] : memref<16x128xf32, #tpu.memory_space<vmem>>, vector<16x128xf32>
    tpu.vector_store %arg6[%c0_13, %c0_14], %16 {strides = array<i32>} : memref<16x128xf32, #tpu.memory_space<vmem>>, vector<16x128xf32>,
    return
  }
  func.func @transform_0(%arg0: i32) -> (i32, i32) {
    %c0_i32 = arith.constant 0 : i32
    %c0_i32_0 = arith.constant 0 : i32
    return %arg0, %c0_i32 : i32, i32
  }
  func.func @transform_1(%arg0: i32) -> (i32, i32) {
    %c0_i32 = arith.constant 0 : i32
    %c0_i32_0 = arith.constant 0 : i32
    %c0_i32_1 = arith.constant 0 : i32
    return %c0_i32, %c0_i32_0 : i32, i32
  }
  func.func @transform_2(%arg0: i32) -> (i32, i32) {
    %c0_i32 = arith.constant 0 : i32
    %c0_i32_0 = arith.constant 0 : i32
    %c0_i32_1 = arith.constant 0 : i32
    return %c0_i32, %c0_i32_0 : i32, i32
  }
  func.func @transform_3(%arg0: i32) -> (i32, i32) {
    %c0_i32 = arith.constant 0 : i32
    %c0_i32_0 = arith.constant 0 : i32
    %c0_i32_1 = arith.constant 0 : i32
    return %c0_i32, %c0_i32_0 : i32, i32
  }
  func.func @transform_4(%arg0: i32) -> (i32, i32) {
    %c0_i32 = arith.constant 0 : i32
    %c0_i32_0 = arith.constant 0 : i32
    %c0_i32_1 = arith.constant 0 : i32
    return %c0_i32, %c0_i32_0 : i32, i32
  }
  func.func @transform_5(%arg0: i32) -> (i32, i32) {
    %c0_i32 = arith.constant 0 : i32
    %c0_i32_0 = arith.constant 0 : i32
    return %arg0, %c0_i32 : i32, i32
  }
}

</mosaic_0001>

<bundles_post_ra>
// kernel: _mlp_forward.1
= control target key start
LH: loop header
LB: loop body
LE: loop exit
PB: predicated region body
PF: predicated region fallthrough
CT: control target
= control target key end

     0   :  { %10 = vsyncpa [#allocation3], 0  ;;  %s517_s0 = inlined_call_operand.vmem [shape: f32[16,128], index: 0, kind: input, shape index: {}]   ;;  %s518_s1 = inlined_call_operand.hbm [shape: f32[128,128], index: 1, kind: input, shape index: {}]   ;;  %s519_s2 = inlined_call_operand.vmem [shape: f32[1,128], index: 2, kind: input, shape index: {}]   ;;  %s520_s3 = inlined_call_operand.hbm [shape: f32[128,128], index: 3, kind: input, shape index: {}]   ;;  %s521_s4 = inlined_call_operand.vmem [shape: f32[1,128], index: 4, kind: input, shape index: {}]   ;;  %s522_s5 = inlined_call_operand.hbm [shape: f32[16,128], index: 5, kind: output, shape index: {}]  }
   0x1   :  { %11 = vsyncpa [#allocation6], 0 }
   0x2   :  { %12 = vsyncpa [#allocation4], 0  ;;  %s452_s18 = smov [#allocation2]  }
   0x3   :  { %s20_s19 = sshll.u32 %s452_s18, 4  ;;  %s21_s19 = int_to_ptr.vmem [resolvable:$true] %s20_s19 }
   0x4   :  { %s394_s20 = scalar_lea.vmem %s21_s19, 2048  ;;  %p399_p1 = scmp.lt.s32.totalorder %s21_s19, %s21_s19 }
   0x5   :  { %p395_p0 = scmp.ne.s32.totalorder %s21_s19, %s394_s20  ;;  %p400_p2 = scmp.lt.s32.totalorder %s394_s20, %s394_s20 }
   0x7   :  { %p401_p3 = por %p400_p2, %p399_p1 }
   0x9   :  { %p402_p4 = pnand %p401_p3, %p395_p0 }
   0xb   :  { %405 = shalt.err (!%p402_p4)
}
   0xc   :  { %s453_s21 = smov 128   ;;  %s454_s22 = smov 8  }
   0xd   :  { %26 = dma.hbm_to_vmem [thread:$0]  %s518_s1, 2048, %s21_s19, [#allocation3], %s453_s21, %s453_s21, %s454_s22  }
   0xe   :  { %s455_s25 = smov [#allocation5]  }
   0xf   :  { %s34_s26 = sshll.u32 %s455_s25, 4  ;;  %s35_s26 = int_to_ptr.vmem [resolvable:$true] %s34_s26 }
  0x10   :  { %s414_s27 = scalar_lea.vmem %s35_s26, 2048  ;;  %p419_p6 = scmp.lt.s32.totalorder %s35_s26, %s35_s26 }
  0x11   :  { %p415_p5 = scmp.ne.s32.totalorder %s35_s26, %s414_s27  ;;  %p420_p7 = scmp.lt.s32.totalorder %s414_s27, %s414_s27 }
  0x13   :  { %p421_p8 = por %p420_p7, %p419_p6 }
  0x15   :  { %p422_p9 = pnand %p421_p8, %p415_p5 }
  0x17   :  { %425 = shalt.err (!%p422_p9)
}
  0x18   :  { %40 = dma.hbm_to_vmem [thread:$0]  %s520_s3, 2048, %s35_s26, [#allocation6], %s453_s21, %s453_s21, %s454_s22  }
  0x19   :  { %446 = dma.done.wait [#allocation3], 2048  }
  0x1a   :  { %447 = vsyncadd [#allocation3], 4294965248 }
  0x1b   :  { %448 = dma.done.wait [#allocation6], 2048  }
  0x1c   :  { %449 = vsyncadd [#allocation6], 4294965248  ;;  %v66_v0 = vld [vmem:[#allocation2 + $0x78] sm:$0xff]  ;;  %v65_v1 = vld [vmem:[#allocation2 + $0x70] sm:$0xff]  ;;  %s456_s10 = smov [#allocation7]  }
  0x1d   :  { %311 = vmatprep.subr.mxu0 %v66_v0  ;;  %v64_v2 = vld [vmem:[#allocation2 + $0x68] sm:$0xff]  ;;  %v63_v3 = vld [vmem:[#allocation2 + $0x60] sm:$0xff]  ;;  %v62_v5 = vld [vmem:[#allocation2 + $0x58] sm:$0xff]  ;;  %s260_s11 = sshll.u32 %s456_s10, 4  ;;  %s261_s11 = int_to_ptr.vmem [resolvable:$true] %s260_s11 }
  0x1e   :  { %312 = vmatpush3.msra.mxu0 %v66_v0  ;;  %v49_v4 = vld [vmem:[%s517_s0] sm:$0xff]  ;;  %v166_v6 = vld [vmem:[#allocation5 + $0x78] sm:$0xff]  ;;  %v165_v7 = vld [vmem:[#allocation5 + $0x70] sm:$0xff]  ;;  %p431_p11 = scmp.lt.s32.totalorder %s261_s11, %s261_s11 }
  0x1f   :  { %313 = vmatprep.subr.mxu0 %v65_v1  ;;  %343 = vmatprep.mubr.f32.mxu0 %v49_v4  ;;  %v61_v8 = vld [vmem:[#allocation2 + $0x50] sm:$0xff]  ;;  %v164_v9 = vld [vmem:[#allocation5 + $0x68] sm:$0xff]  ;;  %v163_v11 = vld [vmem:[#allocation5 + $0x60] sm:$0xff] }
  0x20   :  { %314 = vmatpush3.msra.mxu0 %v65_v1  ;;  %346 = vmatprep.subr.mxu1 %v166_v6  ;;  %v60_v10 = vld [vmem:[#allocation2 + $0x48] sm:$0xff]  ;;  %v59_v12 = vld [vmem:[#allocation2 + $0x40] sm:$0xff]  ;;  %v162_v13 = vld [vmem:[#allocation5 + $0x58] sm:$0xff] }
  0x21   :  { %315 = vmatprep.subr.mxu0 %v64_v2  ;;  %347 = vmatpush3.msra.mxu1 %v166_v6  ;;  %v58_v14 = vld [vmem:[#allocation2 + $0x38] sm:$0xff]  ;;  %v161_v15 = vld [vmem:[#allocation5 + $0x50] sm:$0xff]  ;;  %v160_v17 = vld [vmem:[#allocation5 + $0x48] sm:$0xff] }
  0x22   :  { %316 = vmatpush3.msra.mxu0 %v64_v2  ;;  %348 = vmatprep.subr.mxu1 %v165_v7  ;;  %v57_v16 = vld [vmem:[#allocation2 + $0x30] sm:$0xff]  ;;  %v56_v18 = vld [vmem:[#allocation2 + $0x28] sm:$0xff]  ;;  %v159_v19 = vld [vmem:[#allocation5 + $0x40] sm:$0xff] }
  0x23   :  { %317 = vmatprep.subr.mxu0 %v63_v3  ;;  %349 = vmatpush3.msra.mxu1 %v165_v7  ;;  %v55_v20 = vld [vmem:[#allocation2 + $0x20] sm:$0xff]  ;;  %v158_v21 = vld [vmem:[#allocation5 + $0x38] sm:$0xff]  ;;  %v157_v23 = vld [vmem:[#allocation5 + $0x30] sm:$0xff] }
  0x24   :  { %318 = vmatpush3.msra.mxu0 %v63_v3  ;;  %350 = vmatprep.subr.mxu1 %v164_v9  ;;  %v54_v22 = vld [vmem:[#allocation2 + $0x18] sm:$0xff]  ;;  %v53_v24 = vld [vmem:[#allocation2 + $0x10] sm:$0xff]  ;;  %v156_v25 = vld [vmem:[#allocation5 + $0x28] sm:$0xff] }
  0x25   :  { %319 = vmatprep.subr.mxu0 %v62_v5  ;;  %351 = vmatpush3.msra.mxu1 %v164_v9  ;;  %v52_v26 = vld [vmem:[#allocation2 + $0x8] sm:$0xff]  ;;  %v155_v27 = vld [vmem:[#allocation5 + $0x20] sm:$0xff]  ;;  %v154_v30 = vld [vmem:[#allocation5 + $0x18] sm:$0xff] }
  0x26   :  { %320 = vmatpush3.msra.mxu0 %v62_v5  ;;  %352 = vmatprep.subr.mxu1 %v163_v11  ;;  %v51_v28 = vld [vmem:[#allocation2] sm:$0xff]  ;;  %v50_v29 = vld [vmem:[%s517_s0 + $0x8] sm:$0xff]  ;;  %v153_v31 = vld [vmem:[#allocation5 + $0x10] sm:$0xff] }
  0x27   :  { %321 = vmatprep.subr.mxu0 %v61_v8  ;;  %353 = vmatpush3.msra.mxu1 %v163_v11  ;;  %v152_v32 = vld [vmem:[#allocation5 + $0x8] sm:$0xff]  ;;  %v151_v33 = vld [vmem:[#allocation5] sm:$0xff] }
  0x28   :  { %322 = vmatpush3.msra.mxu0 %v61_v8  ;;  %354 = vmatprep.subr.mxu1 %v162_v13  ;;  %v273_v34 = vld [vmem:[%s519_s2] ss:$0 sm:$0xff]  ;;  %s426_s2 = scalar_lea.vmem %s261_s11, 256 }
  0x29   :  { %323 = vmatprep.subr.mxu0 %v60_v10  ;;  %355 = vmatpush3.msra.mxu1 %v162_v13  ;;  %v274_v41 = vld [vmem:[%s521_s4] ss:$0 sm:$0xff]  ;;  %p427_p10 = scmp.ne.s32.totalorder %s261_s11, %s426_s2  ;;  %p432_p12 = scmp.lt.s32.totalorder %s426_s2, %s426_s2 }
  0x2a   :  { %324 = vmatpush3.msra.mxu0 %v60_v10  ;;  %356 = vmatprep.subr.mxu1 %v161_v15 }
  0x2b   :  { %325 = vmatprep.subr.mxu0 %v59_v12  ;;  %357 = vmatpush3.msra.mxu1 %v161_v15  ;;  %p433_p13 = por %p432_p12, %p431_p11 }
  0x2c   :  { %326 = vmatpush3.msra.mxu0 %v59_v12  ;;  %358 = vmatprep.subr.mxu1 %v160_v17 }
  0x2d   :  { %327 = vmatprep.subr.mxu0 %v58_v14  ;;  %359 = vmatpush3.msra.mxu1 %v160_v17  ;;  %p434_p0 = pnand %p433_p13, %p427_p10 }
  0x2e   :  { %328 = vmatpush3.msra.mxu0 %v58_v14  ;;  %360 = vmatprep.subr.mxu1 %v159_v19 }
  0x2f   :  { %329 = vmatprep.subr.mxu0 %v57_v16  ;;  %361 = vmatpush3.msra.mxu1 %v159_v19 }
  0x30   :  { %330 = vmatpush3.msra.mxu0 %v57_v16  ;;  %362 = vmatprep.subr.mxu1 %v158_v21 }
  0x31   :  { %331 = vmatprep.subr.mxu0 %v56_v18  ;;  %363 = vmatpush3.msra.mxu1 %v158_v21 }
  0x32   :  { %332 = vmatpush3.msra.mxu0 %v56_v18  ;;  %364 = vmatprep.subr.mxu1 %v157_v23 }
  0x33   :  { %333 = vmatprep.subr.mxu0 %v55_v20  ;;  %365 = vmatpush3.msra.mxu1 %v157_v23 }
  0x34   :  { %334 = vmatpush3.msra.mxu0 %v55_v20  ;;  %366 = vmatprep.subr.mxu1 %v156_v25 }
  0x35   :  { %335 = vmatprep.subr.mxu0 %v54_v22  ;;  %367 = vmatpush3.msra.mxu1 %v156_v25 }
  0x36   :  { %336 = vmatpush3.msra.mxu0 %v54_v22  ;;  %368 = vmatprep.subr.mxu1 %v155_v27 }
  0x37   :  { %337 = vmatprep.subr.mxu0 %v53_v24  ;;  %369 = vmatpush3.msra.mxu1 %v155_v27 }
  0x38   :  { %338 = vmatpush3.msra.mxu0 %v53_v24  ;;  %370 = vmatprep.subr.mxu1 %v154_v30 }
  0x39   :  { %339 = vmatprep.subr.mxu0 %v52_v26  ;;  %371 = vmatpush3.msra.mxu1 %v154_v30 }
  0x3a   :  { %340 = vmatpush3.msra.mxu0 %v52_v26  ;;  %372 = vmatprep.subr.mxu1 %v153_v31 }
  0x3b   :  { %341 = vmatprep.subr.mxu0 %v51_v28  ;;  %373 = vmatpush3.msra.mxu1 %v153_v31 }
  0x3c   :  { %342 = vmatpush3.msra.mxu0 %v51_v28  ;;  %374 = vmatprep.subr.mxu1 %v152_v32 }
  0x3d   :  { %344 = vmatmul.mubr.f32.vlgmr.msra.gmra.mxu0 %v50_v29  ;;  %375 = vmatpush3.msra.mxu1 %v152_v32 }
  0x3e   :  { %376 = vmatprep.subr.mxu1 %v151_v33 }
  0x3f   :  { %377 = vmatpush3.msra.mxu1 %v151_v33 }
  0xfd   :  { %v345_v35 = vpop.f32.mrf.mxu0 }
  0xfe   :  { %v146_v36 = vadd.f32 %v345_v35, %v273_v34 }
  0xff   :  { %v140_v37 = vpop.f32.mrf.mxu0 }
 0x100   :  { %v141_v38 = vadd.f32 %v273_v34, %v140_v37  ;;  %v150_v40 = vmax.f32 %v146_v36, 0.0 }
 0x102   :  { %v149_v39 = vmax.f32 %v141_v38, 0.0 }
 0x104   :  { %378 = vmatprep.mubr.f32.mxu1 %v149_v39 }
 0x105   :  { %379 = vmatmul.mubr.f32.vlgmr.msra.gmra.mxu1 %v150_v40 }
 0x1c5   :  { %v380_v42 = vpop.f32.mrf.mxu1 }
 0x1c6   :  { %v246_v43 = vadd.f32 %v380_v42, %v274_v41 }
 0x1c7   :  { %v240_v44 = vpop.f32.mrf.mxu1 }
 0x1c8   :  { %v250_v45 = vmax.f32 %v246_v43, 0.0  ;;  %v241_v46 = vadd.f32 %v274_v41, %v240_v44 }
 0x1ca   :  { %v252_v47 = vmul.f32 0.5, %v250_v45  ;;  %v249_v48 = vmax.f32 %v241_v46, 0.0 }
 0x1cc   :  { %254 = vst [vmem:[#allocation7 + $0x8] sm:$0xff] %v252_v47  ;;  %v251_v49 = vmul.f32 0.5, %v249_v48 }
 0x1ce   :  { %253 = vst [vmem:[#allocation7] sm:$0xff] %v251_v49 }
 0x1cf   :  { %437 = shalt.err (!%p434_p0)
}
 0x1d0   :  { %266 = dma.vmem_to_hbm [thread:$0]  %s261_s11, 256, %s522_s5, [#allocation4], %s453_s21, %s453_s21, %s454_s22  }
 0x1d1   :  { %450 = dma.done.wait [#allocation4], 256  }
 0x1d2   :  { %451 = vsyncadd [#allocation4], 4294967040 }
 0x1d3   :  { %270 = vsyncpa [#allocation3], 1 }
 0x1d4   :  { %271 = vsyncpa [#allocation6], 1 }
 0x1d5   :  { %272 = vsyncpa [#allocation4], 1 }

</bundles_post_ra>
